<compile_context>
chip_gen: v6e
topology: v6e:2x2x1
jax: 0.10.0
libtpu: 0.0.40
codegen_flags: <defaults>
</compile_context>

<pallas_src>
import math

import jax
import jax.numpy as jnp
from jax.experimental import pallas as pl
from jax.experimental.pallas import tpu as pltpu


def _round_up(x: int, m: int) -> int:
    return ((x + m - 1) // m) * m


def _plp_kernel(y_ref, gT_ref, sq_ref, acc_ref):
    """Accumulate grad = y @ G^T over K tiles; emit per-chunk sum(grad**2) per row."""
    k = pl.program_id(1)

    @pl.when(k == 0)
    def _():
        acc_ref[...] = jnp.zeros_like(acc_ref)

    acc_ref[...] += jnp.dot(y_ref[...], gT_ref[...],
                            preferred_element_type=jnp.float32)

    @pl.when(k == pl.num_programs(1) - 1)
    def _():
        g = acc_ref[...]                                   # (B_pad, tn) f32
        sq = jnp.sum(g * g, axis=1, keepdims=True)         # (B_pad, 1)
        sq_ref[...] = jnp.broadcast_to(sq, sq_ref.shape)   # lane-dense (B_pad, 128)


class PathLengthPenalty:
    """JAX/Pallas port of the PyTorch PathLengthPenalty module."""

    _VMEM_BUDGET = 16 * 1024 * 1024   # conservative: fits v5e/v6e and v7x pipelining

    def __init__(self, beta: float, generator_matrix) -> None:
        self.beta = float(beta)
        self.steps = jnp.float32(0.0)       # nn.Parameter(torch.tensor(0.0))
        self.exp_sum_a = jnp.float32(0.0)   # nn.Parameter(torch.tensor(0.0))

        g = jnp.asarray(generator_matrix)   # (L*D, C*H*W) synthetic linear generator
        n, k = g.shape
        self.N, self.K = n, k

        # Split N across 2 parallel chunks (feeds v7x's second TensorCore) when aligned.
        self.nc = 2 if (n >= 256 and n % 256 == 0) else 1
        self.tn = n // self.nc

        # Derive the K tile: largest multiple of 512 keeping the double-buffered bf16
        # input blocks + the f32 accumulator under the VMEM budget, while aiming for
        # at least two K steps so the gT DMA stays pipelined.
        b_pad = 8
        acc_bytes = b_pad * self.tn * 4
        per_tk = 2 * 2 * (b_pad + self.tn)          # 2 buffers, bf16, y + gT rows
        tk_budget = max(512, ((self._VMEM_BUDGET - acc_bytes) // per_tk) // 512 * 512)
        k_ceil = _round_up(k, 512)
        tk_half = _round_up((k + 1) // 2, 512) if k > 512 else k_ceil
        self.tk = max(512, min(k_ceil, tk_half, tk_budget))
        self.K_pad = _round_up(k, self.tk)

        # Cache the generator pre-transposed, K-padded, in bf16 (MXU-native input).
        gT = jnp.zeros((self.K_pad, n), jnp.bfloat16)
        self.gT = gT.at[:k, :].set(g.T.astype(jnp.bfloat16))

    def __call__(self, w, x, key):
        B, L, D = w.shape
        _, C, H, W = x.shape
        image_size = H * W
        assert L * D == self.N and C * H * W == self.K

        # y = torch.randn(x.shape); fed to the MXU in bf16 (accumulation stays f32).
        # TODO(synk): y could be generated in-kernel via pltpu.prng_seed/stateful_normal
        # to drop the HBM round-trip; kept in JAX here for simplicity.
        y = jax.random.normal(key, x.shape, dtype=jnp.float32)
        b_pad = max(8, _round_up(B, 8))                      # fill MXU sublanes
        y_pad = jnp.zeros((b_pad, self.K_pad), jnp.bfloat16)
        y_pad = y_pad.at[:B, :self.K].set(y.reshape(B, self.K).astype(jnp.bfloat16))

        kt = self.K_pad // self.tk
        out_shape = jax.ShapeDtypeStruct((b_pad, self.nc * 128), jnp.float32)

        cost = pl.CostEstimate(
            flops=2 * b_pad * self.K_pad * self.N,
            transcendentals=0,
            bytes_accessed=(y_pad.size * 2 * self.nc + self.gT.size * 2
                            + b_pad * self.nc * 128 * 4),
        )

        sq_out = pl.pallas_call(
            _plp_kernel,
            out_shape=out_shape,
            grid_spec=pltpu.PrefetchScalarGridSpec(
                num_scalar_prefetch=0,
                grid=(self.nc, kt),
                in_specs=[
                    pl.BlockSpec((b_pad, self.tk), lambda n, k: (0, k)),    # y tiles
                    pl.BlockSpec((self.tk, self.tn), lambda n, k: (k, n)),  # G^T tiles
                ],
                out_specs=pl.BlockSpec((b_pad, 128), lambda n, k: (0, n)),
                scratch_shapes=[pltpu.VMEM((b_pad, self.tn), jnp.float32)],
            ),
            compiler_params=pltpu.CompilerParams(
                dimension_semantics=("parallel", "arbitrary"),
                vmem_limit_bytes=32 * 1024 * 1024,
            ),
            cost_estimate=cost,
        )(y_pad, self.gT)

        # Tiny O(B) epilogue in plain JAX: combine per-chunk partial squared sums,
        # apply the folded 1/sqrt(HW) and 1/L scales once, then the loss / EMA
        # bookkeeping of the PyTorch module.
        sq_sum = sq_out.reshape(b_pad, self.nc, 128)[:, :, 0].sum(axis=1)[:B]
        norm = jnp.sqrt(sq_sum / (image_size * L))           # (B,)

        denom = jnp.where(self.steps > 0, 1.0 - self.beta ** self.steps, 1.0)
        a = self.exp_sum_a / denom
        loss = jnp.where(self.steps > 0, jnp.mean((norm - a) ** 2), jnp.float32(0.0))

        mean = jax.lax.stop_gradient(jnp.mean(norm))         # norm.mean().detach()
        # NOTE: host-side EMA-state mutation mirrors the nn.Module buffers; thread it
        # functionally if this is ever wrapped in jit/scan.
        self.exp_sum_a = self.beta * self.exp_sum_a + (1.0 - self.beta) * mean
        self.steps = self.steps + 1.0
        return loss


if __name__ == "__main__":
    key = jax.random.PRNGKey(0)
    k_w, k_g, k_y1, k_y2 = jax.random.split(key, 4)

    B, L, D = 2, 8, 32        # w: (batch, n_layers, d_latent)
    C, H, W = 4, 16, 16       # x: NCHW image

    w = jax.random.normal(k_w, (B, L, D), dtype=jnp.float32)
    # Deterministic synthetic linear "generator" standing in for the StyleGAN generator.
    G = jax.random.normal(k_g, (L * D, C * H * W), dtype=jnp.float32) / math.sqrt(L * D)
    x = (w.reshape(B, L * D) @ G).reshape(B, C, H, W)

    plp = PathLengthPenalty(beta=0.99, generator_matrix=G)

    loss0 = plp(w, x, k_y1)   # steps == 0 path: loss == 0, EMA state initialized
    loss1 = plp(w, x, k_y2)   # steps > 0  path: nonzero loss vs running average

    jax.block_until_ready((loss0, loss1))
    print("KERNEL_OK")
</pallas_src>

<mosaic_0001>
module attributes {stable_mosaic.version = 11 : i64} {
  func.func @_plp_kernel(%arg0: i32, %arg1: i32, %arg2: memref<8x512xbf16, #tpu.memory_space<vmem>>, %arg3: memref<512x128xbf16, #tpu.memory_space<vmem>>, %arg4: memref<8x128xf32, #tpu.memory_space<vmem>>, %arg5: memref<8x128xf32, #tpu.memory_space<vmem>>) attributes {dimension_semantics = [#tpu.dimension_semantics<parallel>, #tpu.dimension_semantics<arbitrary>], iteration_bounds = array<i64: 2, 2>, scalar_prefetch = 0 : i64, scratch_operands = 1 : i64, tpu.core_type = #tpu.core_type<tc>, window_params = [{transform_indices = @transform_0, window_bounds = array<i64: 8, 512>}, {transform_indices = @transform_1, window_bounds = array<i64: 512, 128>}, {transform_indices = @transform_2, window_bounds = array<i64: 8, 128>}]} {
    %c0_i32 = arith.constant 0 : i32
    %0 = arith.cmpi eq, %arg1, %c0_i32 : i32
    %1 = arith.extui %0 : i1 to i32
    %c0_i32_0 = arith.constant 0 : i32
    %2 = arith.cmpi ne, %1, %c0_i32_0 : i32
    scf.if %2 {
      %cst_9 = arith.constant 0.000000e+00 : f32
      %12 = vector.broadcast %cst_9 : f32 to vector<8x128xf32>
      %c0_10 = arith.constant 0 : index
      %c0_11 = arith.constant 0 : index
      %13 = vector.load %arg5[%c0_10, %c0_11] : memref<8x128xf32, #tpu.memory_space<vmem>>, vector<8x128xf32>
      tpu.vector_store %arg5[%c0_10, %c0_11], %12 {strides = array<i32>} : memref<8x128xf32, #tpu.memory_space<vmem>>, vector<8x128xf32>,
    } else {
    }
    %c0 = arith.constant 0 : index
    %c0_1 = arith.constant 0 : index
    %3 = vector.load %arg5[%c0, %c0_1] : memref<8x128xf32, #tpu.memory_space<vmem>>, vector<8x128xf32>
    %c0_2 = arith.constant 0 : index
    %c0_3 = arith.constant 0 : index
    %4 = vector.load %arg2[%c0_2, %c0_3] : memref<8x512xbf16, #tpu.memory_space<vmem>>, vector<8x512xbf16>
    %c0_4 = arith.constant 0 : index
    %c0_5 = arith.constant 0 : index
    %5 = vector.load %arg3[%c0_4, %c0_5] : memref<512x128xbf16, #tpu.memory_space<vmem>>, vector<512x128xbf16>
    %cst = arith.constant dense<0.000000e+00> : vector<8x128xf32>
    %6 = tpu.matmul %4, %5, %cst {dimension_numbers = #tpu.dot_dimension_numbers<[1], [0], [0], [1], [0, 0, 1, 1], [], []>} : vector<8x512xbf16>, vector<512x128xbf16>, vector<8x128xf32> -> vector<8x128xf32>
    %7 = arith.addf %3, %6 : vector<8x128xf32>
    %c0_6 = arith.constant 0 : index
    %c0_7 = arith.constant 0 : index
    %8 = vector.load %arg5[%c0_6, %c0_7] : memref<8x128xf32, #tpu.memory_space<vmem>>, vector<8x128xf32>
    tpu.vector_store %arg5[%c0_6, %c0_7], %7 {strides = array<i32>} : memref<8x128xf32, #tpu.memory_space<vmem>>, vector<8x128xf32>,
    %c1_i32 = arith.constant 1 : i32
    %9 = arith.cmpi eq, %arg1, %c1_i32 : i32
    %10 = arith.extui %9 : i1 to i32
    %c0_i32_8 = arith.constant 0 : i32
    %11 = arith.cmpi ne, %10, %c0_i32_8 : i32
    scf.if %11 {
      %c0_9 = arith.constant 0 : index
      %c0_10 = arith.constant 0 : index
      %12 = vector.load %arg5[%c0_9, %c0_10] : memref<8x128xf32, #tpu.memory_space<vmem>>, vector<8x128xf32>
      %13 = arith.mulf %12, %12 : vector<8x128xf32>
      %cst_11 = arith.constant dense<0.000000e+00> : vector<8xf32>
      %14 = vector.multi_reduction <add>, %13, %cst_11 [1] : vector<8x128xf32> to vector<8xf32>
      %15 = vector.shape_cast %14 : vector<8xf32> to vector<8x1xf32>
      %16 = vector.shape_cast %15 : vector<8x1xf32> to vector<8x1xf32>
      %17 = vector.broadcast %16 : vector<8x1xf32> to vector<8x128xf32>
      %c0_12 = arith.constant 0 : index
      %c0_13 = arith.constant 0 : index
      %18 = vector.load %arg4[%c0_12, %c0_13] : memref<8x128xf32, #tpu.memory_space<vmem>>, vector<8x128xf32>
      tpu.vector_store %arg4[%c0_12, %c0_13], %17 {strides = array<i32>} : memref<8x128xf32, #tpu.memory_space<vmem>>, vector<8x128xf32>,
    } else {
    }
    return
  }
  func.func @transform_0(%arg0: i32, %arg1: i32) -> (i32, i32) {
    %c0_i32 = arith.constant 0 : i32
    %c0_i32_0 = arith.constant 0 : i32
    return %c0_i32, %arg1 : i32, i32
  }
  func.func @transform_1(%arg0: i32, %arg1: i32) -> (i32, i32) {
    %c0_i32 = arith.constant 0 : i32
    return %arg1, %arg0 : i32, i32
  }
  func.func @transform_2(%arg0: i32, %arg1: i32) -> (i32, i32) {
    %c0_i32 = arith.constant 0 : i32
    %c0_i32_0 = arith.constant 0 : i32
    return %c0_i32, %arg0 : i32, i32
  }
}

</mosaic_0001>

<bundles_post_ra>
// kernel: tpu_custom_call.1
= control target key start
LH: loop header
LB: loop body
LE: loop exit
PB: predicated region body
PF: predicated region fallthrough
CT: control target
= control target key end

     0   :  { %s1532_s0 = inlined_call_operand.hbm [shape: bf16[8,1024], index: 0, kind: input, shape index: {}]   ;;  %s1533_s1 = inlined_call_operand.hbm [shape: bf16[1024,256], index: 1, kind: input, shape index: {}]   ;;  %s1534_s2 = inlined_call_operand.hbm [shape: f32[8,256], index: 2, kind: output, shape index: {}]  }
   0x1   :  { %1542 = sst [smem:[#allocation20_spill]] %s1532_s0 }
   0x2   :  { %7 = vsyncpa [#allocation4], 0 }
   0x3   :  { %9 = vsyncpa [#allocation4 + $0x1], 0 }
   0x4   :  { %10 = vsyncpa [#allocation7], 0 }
   0x5   :  { %12 = vsyncpa [#allocation7 + $0x1], 0 }
   0x6   :  { %13 = vsyncpa [#allocation5], 0 }
   0x7   :  { %15 = vsyncpa [#allocation5 + $0x1], 0  ;;  %s1210_s9 = smov 0   ;;  %s1212_s10 = smov 0  }
   0x8   :  { %s1214_s11 = smov 0   ;;  %s1216_s12 = smov 0  }
   0x9   :  { %s1218_s13 = smov 0   ;;  %s1220_s14 = smov 0  }
   0xa   :  { %s1222_s15 = smov 0   ;;  %s1224_s16 = smov 0  }
   0xb   :  { %s1226_s17 = smov 0   ;;  %s1228_s18 = smov 0  }
   0xc   :  { %s1230_s19 = smov 0   ;;  %s1232_s20 = smov 0  }
   0xd   :  { %s1234_s21 = smov 0   ;;  %s1236_s22 = smov 0  }
   0xe LB: > { %1543 = sst [smem:[#allocation12_spill]] %s1142_s11  ;;  %s708_s23 = sadd.s32 4294967295, %s1186_s22   ;;  %s1186_s22 = sphi %s1236_s22, %s21_s22   ;;  %s1182_s21 = sphi %s1234_s21, %s1584_s21   ;;  %s1178_s20 = sphi %s1232_s20, %s1572_s20   ;;  %s1174_s19 = sphi %s1230_s19, %s1583_s19   ;;  %s1170_s18 = sphi %s1228_s18, %s1571_s18   ;;  %s1166_s17 = sphi %s1226_s17, %s1582_s17   ;;  %s1162_s16 = sphi %s1224_s16, %s1581_s16   ;;  %s1158_s15 = sphi %s1222_s15, %s1580_s15   ;;  %s1154_s14 = sphi %s1220_s14, %s1579_s14   ;;  %s1150_s13 = sphi %s1218_s13, %s1578_s13   ;;  %s1146_s12 = sphi %s1216_s12, %s1577_s12   ;;  %s1142_s11 = sphi %s1214_s11, %s1567_s11   ;;  %s1138_s10 = sphi %s1212_s10, %s1576_s10   ;;  %s1134_s9 = sphi %s1210_s9, %s1575_s9  }
   0xf   : > { %1544 = sst [smem:[#allocation13_spill]] %s1166_s17  ;;  %s709_s24 = sadd.s32 4294967294, %s1186_s22  }
  0x10   : > { %1545 = sst [smem:[#allocation14_spill]] %s1178_s20  ;;  %s30_s25 = sadd.s32 1, %s1178_s20 }
  0x11   : > { %s33_s26 = sadd.s32 1, %s1182_s21  ;;  %p31_p0 = scmp.ge.s32.totalorder %s30_s25, 2 }
  0x12   : > { %s40_s27 = sadd.s32 1, %s1166_s17  ;;  %p47_p1 = scmp.ne.s32.totalorder %s1166_s17, %s1162_s16 }
  0x13   : > { %p48_p2 = scmp.eq.s32.totalorder %s1186_s22, 0  ;;  %s1586_s25 = smov (%p31_p0, %s30_s25), 0 }
  0x14   : > { %1546 = sst [smem:[#allocation15_spill]] %s1586_s25  ;;  %s1588_s26 = smov (!%p31_p0, %s33_s26), %s1182_s21 }
  0x15   : > { %s37_s28 = ssub.s32 %s1178_s20, %s1586_s25  ;;  %p1293_p3 = por %p48_p2, %p47_p1 }
  0x16   : > { %p35_p4 = scmp.ge.s32.totalorder %s1588_s26, 2  ;;  %p38_p5 = scmp.eq.s32.totalorder %s37_s28, 0 }
  0x17   : > { %p53_p6 = scmp.ne.s32.totalorder %s1162_s16, %s1158_s15  ;;  %p1300_p7 = scmp.eq.s32.totalorder %s708_s23, 0 }
  0x18   : > { %s1590_s26 = smov (%p35_p4, %s1588_s26), 0  ;;  %s68_s7 = sadd.s32 1, %s1154_s14 }
  0x19   : > { %1549 = sst [smem:[#allocation16_spill]] %s1590_s26  ;;  %p1311_p8 = por %p1300_p7, %p53_p6 }
  0x1a   : > { %s1307_s3 = scalar_select %p38_p5, %s1166_s17, %s40_s27  }
  0x1b   : > { %s64_s5 = ssub.s32 %s1182_s21, %s1590_s26  ;;  %p75_p10 = scmp.ne.s32.totalorder %s1154_s14, %s1150_s13 }
  0x1c   : > { %1550 = sst [smem:[#allocation17_spill]] %s1307_s3  ;;  %s65_s6 = sor.u32 %s64_s5, %s37_s28 }
  0x1d   : > { %p66_p9 = scmp.eq.s32.totalorder %s65_s6, 0  ;;  %p81_p11 = scmp.ne.s32.totalorder %s1150_s13, %s1146_s12 }
  0x1e   : > { %p92_p12 = scmp.eq.s32.totalorder %s64_s5, 0  ;;  %p1327_p13 = por %p75_p10, %p48_p2 }
  0x1f   : > { %s1323_s8 = scalar_select %p66_p9, %s1154_s14, %s68_s7  }
  0x20   : > { %p1333_p0 = por %p81_p11, %p1300_p7  ;;  %s94_s28 = sadd.s32 1, %s1142_s11 }
  0x21   : > { %1552 = sst [smem:[#allocation18_spill]] %s1323_s8  ;;  %p104_p1 = scmp.ne.s32.totalorder %s1142_s11, %s1138_s10 }
  0x22   : > { %s1554_s27 = scalar_select %p1333_p0, 1, 0 }
  0x23   : > { %s1341_s6 = scalar_select %p92_p12, %s1142_s11, %s94_s28  }
  0x24   : > { %p105_p4 = scmp.eq.s32.totalorder %s708_s23, 3  ;;  %p110_p5 = scmp.ne.s32.totalorder %s1138_s10, %s1134_s9 }
  0x25   : > { %1555 = sst [smem:[#allocation19_spill]] %s1341_s6  ;;  %p111_p2 = scmp.eq.s32.totalorder %s709_s24, 3 }
  0x26   : > { %p1349_p6 = por %p105_p4, %p104_p1  ;;  %p828_p7 = scmp.lt.s32.totalorder %s1186_s22, 4 }
  0x27   : > { %p1354_p9 = por %p111_p2, %p110_p5  ;;  %s131_s5 = sand.u32 1, %s1166_s17  }
  0x28   : > { %s1556_s12 = scalar_select %p1349_p6, 1, 0 }
  0x29   : > { %s1557_s30 = scalar_select %p1354_p9, 1, 0 }
  0x2a   : > { %s712_s7 = sshll.u32 %s131_s5, 4  ;;  %s765_s28 = sshll.u32 %s1178_s20, 8 }
  0x2b   : > { %s1558_s0 = sld [smem:[#allocation20_spill]]  ;;  %s135_s3 = scalar_lea.vmem [#allocation3], %s712_s7 }
  0x2c   : > { %s143_s8 = sshll.u32 %s135_s3, 4  ;;  %p1365_p10 = pnand %p828_p7, %p1293_p3  ;;  %s144_s8 = int_to_ptr.vmem [resolvable:$true] %s143_s8 }
  0x2d   : > { %s766_s6 = sshll.u32 %s1178_s20, 7  ;;  %p1372_p11 = pnand %p828_p7, %p1327_p13 }
  0x2e   : > { %p719_p12 = scmp.ge.s32.totalorder %s1186_s22, 1  ;;  %s132_s17 = scalar_lea.sflag [#allocation4], %s131_s5 }
  0x2f   : > { %p984_p1 = pneg %p1365_p10  ;;  %s995_s25 = scalar_lea.vmem %s144_s8, 256 }
  0x30   : > { %p996_p4 = scmp.ne.s32.totalorder %s144_s8, %s995_s25  ;;  %s1188_s26 = smov [#allocation3]  }
  0x31   : > { %s141_s23 = scalar_lea.hbm %s1558_s0, %s765_s28  ;;  %s1000_s29 = sshll.u32 %s1188_s26, 4  ;;  %s1001_s29 = int_to_ptr.vmem [resolvable:$false] %s1000_s29 }
  0x32   : > { %p998_p5 = pnand %p996_p4, %p984_p1  ;;  %s1002_s3 = scalar_lea.vmem %s1001_s29, 512 }
  0x33   : > { %p1003_p3 = scmp.lt.s32.totalorder %s144_s8, %s1001_s29  ;;  %p1004_p9 = scmp.lt.s32.totalorder %s1002_s3, %s995_s25 }
  0x34   : > { %p999_p2 = pneg %p998_p5 }
  0x35   : > { %p1005_p6 = por %p1004_p9, %p1003_p3 }
  0x37   : > { %p1006_p0 = pnand %p1005_p6, %p999_p2 }
  0x39   : > { %1009 = shalt.err (!%p1006_p0)
}
  0x3a   : > { %820 = dma.hbm_to_vmem [thread:$0]  (!%p1365_p10), %s141_s23, 256, %s144_s8, %s132_s17  }
  0x3b   : > { %p171_p13 = scmp.lt.s32.totalorder %s1186_s22, 5  ;;  %s150_s15 = sand.u32 1, %s1154_s14  }
  0x3c   : > { %s160_s5 = sadd.s32 %s1182_s21, %s766_s6  ;;  %s715_s28 = sshll.u32 %s150_s15, 8 }
  0x3d   : > { %p1386_p7 = pnand %p719_p12, %p171_p13  ;;  %s718_s25 = sshll.u32 %s160_s5, 6 }
  0x3e   : > { %s162_s24 = scalar_lea.hbm %s1533_s1, %s718_s25  ;;  %s154_s3 = scalar_lea.vmem [#allocation6], %s715_s28 }
  0x3f   : > { %s163_s0 = sshll.u32 %s154_s3, 4  ;;  %s151_s20 = scalar_lea.sflag [#allocation7], %s150_s15  ;;  %s164_s0 = int_to_ptr.vmem [resolvable:$true] %s163_s0 }
  0x40   : > { %p1012_p0 = pneg %p1372_p11  ;;  %s1023_s17 = scalar_lea.vmem %s164_s0, 4096 }
  0x41   : > { %p1024_p6 = scmp.ne.s32.totalorder %s164_s0, %s1023_s17  ;;  %s1189_s8 = smov [#allocation6]  }
  0x42   : > { %s1028_s6 = sshll.u32 %s1189_s8, 4  ;;  %s1029_s6 = int_to_ptr.vmem [resolvable:$false] %s1028_s6 }
  0x43   : > { %p1026_p9 = pnand %p1024_p6, %p1012_p0  ;;  %s1030_s23 = scalar_lea.vmem %s1029_s6, 8192 }
  0x44   : > { %p1031_p12 = scmp.lt.s32.totalorder %s164_s0, %s1029_s6  ;;  %p1032_p1 = scmp.lt.s32.totalorder %s1030_s23, %s1023_s17 }
  0x45   : > { %p1027_p10 = pneg %p1026_p9 }
  0x46   : > { %p1033_p4 = por %p1032_p1, %p1031_p12 }
  0x48   : > { %p1034_p5 = pnand %p1033_p4, %p1027_p10 }
  0x4a   : > { %1037 = shalt.err (!%p1034_p5)
}
  0x4b   : > { %s1190_s5 = smov 128   ;;  %s1191_s28 = smov 64  }
  0x4c   : > { %s1192_s25 = smov 4   ;;  %175 = sbr.rel (%p1386_p7) target bundleno = 504 (0x1f8), region = 28 }
  0x4d   : > { %823 = dma.hbm_to_vmem [thread:$0]  (!%p1372_p11), %s162_s24, 4096, %s164_s0, %s151_s20, %s1190_s5, %s1191_s28, %s1192_s25  }
  0x4e   : > { %s177_s15 = sand.u32 (!%p1386_p7), 1, %s1162_s16  }
  0x4f   : > { %s1400_s26 = sshll.u32 (!%p1386_p7), %s177_s15, 4  ;;  %s178_s29 = scalar_lea.sflag (!%p1386_p7), [#allocation4], %s177_s15 }
  0x50   : > { %s181_s3 = scalar_lea.vmem (!%p1386_p7), [#allocation3], %s1400_s26 }
  0x51   : > { %1121 = dma.done.wait (%p1311_p8), %s178_s29, 256  }
  0x52   : > { %1123 = vsyncadd (%p1311_p8), %s178_s29, 4294967040  ;;  %s186_s11 = sand.u32 1, %s1150_s13   ;;  %p1562_p11 = scmp.ne.s32.totalorder %s1554_s27, 0 }
  0x53   : > { %s721_s0 = sshll.u32 %s186_s11, 8  ;;  %s187_s20 = scalar_lea.sflag [#allocation7], %s186_s11 }
  0x54   : > { %s1408_s7 = scalar_lea.vmem [#allocation6], %s721_s0 }
  0x55   : > { %1125 = dma.done.wait (%p1562_p11), %s187_s20, 4096  }
  0x56   : > { %1127 = vsyncadd (%p1562_p11), %s187_s20, 4294963200  ;;  %s213_s24 = sand.u32 1, %s1138_s10   ;;  %p723_p8 = scmp.ne.s32.totalorder %s1170_s18, 0 }
  0x57   : > { %s1417_s17 = sshll.u32 %s213_s24, 3 }
  0x58   : > { %s215_s4 = scalar_lea.vmem [#allocation8], %s1417_s17  ;;  %222 = sbr.rel (%p723_p8) target bundleno = 95 (0x5f), region = 40 }
  0x5d   : > { %v1193_v0 = vmov 0.0  }
  0x5e   : > { %223 = vst [vmem:[#allocation2] sm:$0xff] %v1193_v0 }
  0x5f PF: > { %v946_v1 = vld [vmem:[%s1408_s7 + $0x78] sm:$0xff]   ;;  %v950_v5 = vld [vmem:[%s1408_s7 + $0x70] sm:$0xff]   ;;  %v954_v9 = vld [vmem:[%s1408_s7 + $0x68] sm:$0xff]   ;;  %p760_p2 = scmp.ne.s32.totalorder %s1170_s18, 1 }
  0x60   : > { %v947_v2 = vld [vmem:[%s1408_s7 + $0xf8] sm:$0xff]   ;;  %767 = vmatprep.subr.bf16.mxu0 %v946_v1  ;;  %v951_v6 = vld [vmem:[%s1408_s7 + $0xf0] sm:$0xff]   ;;  %v955_v10 = vld [vmem:[%s1408_s7 + $0xe8] sm:$0xff]  }
  0x61   : > { %v948_v3 = vld [vmem:[%s1408_s7 + $0x38] sm:$0xff]   ;;  %789 = vmatprep.subr.bf16.mxu1 %v947_v2  ;;  %v952_v7 = vld [vmem:[%s1408_s7 + $0x30] sm:$0xff]   ;;  %v956_v11 = vld [vmem:[%s1408_s7 + $0x28] sm:$0xff]  }
  0x62   : > { %v949_v4 = vld [vmem:[%s1408_s7 + $0xb8] sm:$0xff]   ;;  %768 = vmatpush3.bf16.msra.mxu0 %v948_v3  ;;  %v953_v8 = vld [vmem:[%s1408_s7 + $0xb0] sm:$0xff]   ;;  %v957_v12 = vld [vmem:[%s1408_s7 + $0xa8] sm:$0xff]  }
  0x63   : > { %790 = vmatpush3.bf16.msra.mxu1 %v949_v4  ;;  %769 = vmatprep.subr.bf16.mxu0 %v950_v5  ;;  %v958_v13 = vld [vmem:[%s1408_s7 + $0x60] sm:$0xff]   ;;  %v962_v17 = vld [vmem:[%s1408_s7 + $0x58] sm:$0xff]   ;;  %v966_v21 = vld [vmem:[%s1408_s7 + $0x50] sm:$0xff]  }
  0x64   : > { %791 = vmatprep.subr.bf16.mxu1 %v951_v6  ;;  %v959_v14 = vld [vmem:[%s1408_s7 + $0xe0] sm:$0xff]   ;;  %v963_v18 = vld [vmem:[%s1408_s7 + $0xd8] sm:$0xff]   ;;  %v967_v22 = vld [vmem:[%s1408_s7 + $0xd0] sm:$0xff]  }
  0x65   : > { %v960_v15 = vld [vmem:[%s1408_s7 + $0x20] sm:$0xff]   ;;  %v964_v19 = vld [vmem:[%s1408_s7 + $0x18] sm:$0xff]   ;;  %v968_v23 = vld [vmem:[%s1408_s7 + $0x10] sm:$0xff]  }
  0x66   : > { %770 = vmatpush3.bf16.msra.mxu0 %v952_v7  ;;  %v961_v16 = vld [vmem:[%s1408_s7 + $0xa0] sm:$0xff]   ;;  %v965_v20 = vld [vmem:[%s1408_s7 + $0x98] sm:$0xff]   ;;  %v969_v24 = vld [vmem:[%s1408_s7 + $0x90] sm:$0xff]  }
  0x67   : > { %792 = vmatpush3.bf16.msra.mxu1 %v953_v8  ;;  %771 = vmatprep.subr.bf16.mxu0 %v954_v9  ;;  %v970_v25 = vld [vmem:[%s1408_s7 + $0x48] sm:$0xff]   ;;  %v974_v29 = vld [vmem:[%s1408_s7 + $0x40] sm:$0xff]   ;;  %v224_v45 = vld [vmem:[#allocation2] sm:$0xff] }
  0x68   : > { %793 = vmatprep.subr.bf16.mxu1 %v955_v10  ;;  %v971_v26 = vld [vmem:[%s1408_s7 + $0xc8] sm:$0xff]   ;;  %v975_v30 = vld [vmem:[%s1408_s7 + $0xc0] sm:$0xff]  }
  0x69   : > { %v972_v27 = vld [vmem:[%s1408_s7 + $0x8] sm:$0xff]   ;;  %v976_v31 = vld [vmem:[%s1408_s7] sm:$0xff]  }
  0x6a   : > { %772 = vmatpush3.bf16.msra.mxu0 %v956_v11  ;;  %v973_v28 = vld [vmem:[%s1408_s7 + $0x88] sm:$0xff]   ;;  %v977_v32 = vld [vmem:[%s1408_s7 + $0x80] sm:$0xff]  }
  0x6b   : > { %794 = vmatpush3.bf16.msra.mxu1 %v957_v12  ;;  %773 = vmatprep.subr.bf16.mxu0 %v958_v13  ;;  %v225_v33 = vld [vmem:[%s181_s3] sm:$0xff]  ;;  %v226_v34 = vld [vmem:[%s181_s3 + $0x8] sm:$0xff] }
  0x6c   : > { %795 = vmatprep.subr.bf16.mxu1 %v959_v14  ;;  %v724_v35 = vcombine.low %v225_v33, %v225_v33  ;;  %v725_v36 = vcombine.high %v225_v33, %v225_v33  ;;  %v726_v37 = vcombine.low %v226_v34, %v226_v34  ;;  %v727_v38 = vcombine.high %v226_v34, %v226_v34 }
  0x6e   : > { %774 = vmatpush3.bf16.msra.mxu0 %v960_v15  ;;  %529 = vmatprep.mubr.bf16.mxu0 %v725_v36 }
  0x6f   : > { %796 = vmatpush3.bf16.msra.mxu1 %v961_v16  ;;  %775 = vmatprep.subr.bf16.mxu0 %v962_v17 }
  0x70   : > { %797 = vmatprep.subr.bf16.mxu1 %v963_v18  ;;  %569 = vmatprep.mubr.bf16.mxu1 %v727_v38 }
  0x72   : > { %776 = vmatpush3.bf16.msra.mxu0 %v964_v19 }
  0x73   : > { %798 = vmatpush3.bf16.msra.mxu1 %v965_v20  ;;  %777 = vmatprep.subr.bf16.mxu0 %v966_v21 }
  0x74   : > { %799 = vmatprep.subr.bf16.mxu1 %v967_v22 }
  0x76   : > { %778 = vmatpush3.bf16.msra.mxu0 %v968_v23 }
  0x77   : > { %800 = vmatpush3.bf16.msra.mxu1 %v969_v24  ;;  %779 = vmatprep.subr.bf16.mxu0 %v970_v25 }
  0x78   : > { %801 = vmatprep.subr.bf16.mxu1 %v971_v26 }
  0x7a   : > { %780 = vmatpush3.bf16.msra.mxu0 %v972_v27 }
  0x7b   : > { %802 = vmatpush3.bf16.msra.mxu1 %v973_v28  ;;  %781 = vmatprep.subr.bf16.mxu0 %v974_v29 }
  0x7c   : > { %803 = vmatprep.subr.bf16.mxu1 %v975_v30 }
  0x7e   : > { %782 = vmatpush3.bf16.msra.mxu0 %v976_v31 }
  0x7f   : > { %804 = vmatpush3.bf16.msra.mxu1 %v977_v32 }
  0x81   : > { %530 = vmatmul.mubr.bf16.vlgmr.msra.gmra.mxu0 %v724_v35 }
  0x82   : > { %570 = vmatmul.mubr.bf16.vlgmr.msra.gmra.mxu1 %v726_v37 }
 0x141   : > { %v783_v39 = vpop.f32.mrf.mxu0 }
 0x142   : > { %v805_v40 = vpop.f32.mrf.mxu1 }
 0x143   : > { %v784_v41 = vpop.f32.mrf.mxu0 }
 0x144   : > { %v806_v42 = vpop.f32.mrf.mxu1  ;;  %v785_v43 = vadd.f32 %v784_v41, %v783_v39 }
 0x145   : > { %v807_v44 = vadd.f32 %v806_v42, %v805_v40  ;;  %v786_v46 = vpop.f32.mrf.mxu0 }
 0x146   : > { %v808_v47 = vpop.f32.mrf.mxu1 }
 0x147   : > { %v572_v48 = vadd.f32 %v807_v44, %v785_v43  ;;  %v787_v49 = vpop.f32.mrf.mxu0  ;;  %582 = sbr.rel (%p760_p2) target bundleno = 480 (0x1e0), region = 44 }
 0x148   : > { %v809_v50 = vpop.f32.mrf.mxu1 }
 0x149   : > { %v577_v51 = vadd.f32 %v572_v48, %v224_v45 }
 0x14b   : > { %578 = vst [vmem:[#allocation2] sm:$0xff] %v577_v51 }
 0x152   : > { %v583_v52 = vld [vmem:[#allocation2] sm:$0xff] }
 0x153   : > { %v584_v53 = vmul.f32 %v583_v52, %v583_v52 }
 0x155   : > { %585 = vadd.xlane.f32.xlu0 %v584_v53 }
 0x1de   : > { %v586_v54 = vpop.xlane.xlu0 %585 }
 0x1df   : > { %587 = vst [vmem:[%s215_s4] sm:$0xff] %v586_v54 }
 0x1e0 PF: > { %s762_s27 = sshll.u32 %s1174_s19, 7  ;;  %s602_s18 = sshll.u32 %s215_s4, 4  ;;  %s603_s18 = int_to_ptr.vmem [resolvable:$true] %s602_s18 }
 0x1e1   : > { %s600_s23 = scalar_lea.hbm %s1534_s2, %s762_s27  ;;  %s589_s5 = scalar_lea.sflag [#allocation5], %s213_s24 }
 0x1e2   : > { %s1038_s28 = scalar_lea.vmem %s603_s18, 128  ;;  %p1563_p13 = scmp.ne.s32.totalorder %s1556_s12, 0 }
 0x1e3   : > { %p1039_p3 = scmp.ne.s32.totalorder %s603_s18, %s1038_s28  ;;  %s1194_s25 = smov [#allocation8]  }
 0x1e4   : > { %s1042_s15 = sshll.u32 %s1194_s25, 4  ;;  %s1043_s15 = int_to_ptr.vmem [resolvable:$false] %s1042_s15 }
 0x1e5   : > { %p1040_p7 = pnand %p1039_p3, %p1563_p13  ;;  %s1044_s26 = scalar_lea.vmem %s1043_s15, 256 }
 0x1e6   : > { %p1045_p6 = scmp.lt.s32.totalorder %s603_s18, %s1043_s15  ;;  %p1046_p9 = scmp.lt.s32.totalorder %s1044_s26, %s1038_s28 }
 0x1e7   : > { %p1041_p0 = pneg %p1040_p7 }
 0x1e8   : > { %p1047_p10 = por %p1046_p9, %p1045_p6 }
 0x1ea   : > { %p1048_p12 = pnand %p1047_p10, %p1041_p0 }
 0x1ec   : > { %1051 = shalt.err (!%p1048_p12)
}
 0x1ed   : > { %s1052_s19 = scalar_lea.hbm %s600_s23, 128  ;;  %s1056_s11 = scalar_lea.hbm %s1534_s2, 256 }
 0x1ee   : > { %p1053_p1 = scmp.ne.s32.totalorder %s600_s23, %s1052_s19  ;;  %p1057_p11 = scmp.lt.s32.totalorder %s600_s23, %s1534_s2 }
 0x1ef   : > { %p1058_p8 = scmp.lt.s32.totalorder %s1056_s11, %s1052_s19 }
 0x1f0   : > { %p1054_p4 = pnand %p1053_p1, %p1563_p13 }
 0x1f1   : > { %p1059_p2 = por %p1058_p8, %p1057_p11 }
 0x1f2   : > { %p1055_p5 = pneg %p1054_p4 }
 0x1f4   : > { %p1060_p3 = pnand %p1059_p2, %p1055_p5 }
 0x1f6   : > { %1063 = shalt.err (!%p1060_p3)
}
 0x1f7   : > { %815 = dma.vmem_to_hbm [thread:$0]  (%p1563_p13), %s603_s18, 128, %s600_s23, %s589_s5  }
 0x1f8 PF: > { %p829_p7 = scmp.ge.s32.totalorder %s1186_s22, 2  ;;  %s614_s7 = sand.u32 1, %s1134_s9  }
 0x1f9   : > { %p1564_p0 = scmp.ne.s32.totalorder %s1557_s30, 0  ;;  %s615_s24 = scalar_lea.sflag [#allocation5], %s614_s7 }
 0x1fb   : > { %p825_p6 = pnand %p829_p7, %p1564_p0 }
 0x1fd   : > { %p826_p9 = pneg %p825_p6 }
 0x1ff   : > { %1129 = dma.done.wait (%p826_p9), %s615_s24, 128  }
 0x200   : > { %1131 = vsyncadd (%p826_p9), %s615_s24, 4294967168  ;;  %s21_s22 = sadd.s32 1, %s1186_s22   ;;  %s1566_s12 = sld [smem:[#allocation12_spill]] }
 0x201   : > { %p1485_p10 = scmp.ge.s32.totalorder %s21_s22, 6   ;;  %s1567_s11 = sld [smem:[#allocation19_spill]] }
 0x202   : > { %s1568_s4 = sld [smem:[#allocation18_spill]]  ;;  %s1575_s9 = smov %s1138_s10 }
 0x203   : > { %s1569_s27 = sld [smem:[#allocation13_spill]]  ;;  %s1580_s15 = smov %s1162_s16 }
 0x204   : > { %s1570_s30 = sld [smem:[#allocation17_spill]]  ;;  %s1583_s19 = smov %s1182_s21 }
 0x205   : > { %s1571_s18 = sld [smem:[#allocation14_spill]] }
 0x206   : > { %s1572_s20 = sld [smem:[#allocation15_spill]]  ;;  %s1576_s10 = smov %s1566_s12 }
 0x207   : > { %s1573_s8 = sld [smem:[#allocation16_spill]]  ;;  %s1577_s12 = smov %s1150_s13 }
 0x208   : > { %s1578_s13 = smov %s1154_s14  ;;  %s1579_s14 = smov %s1568_s4 }
 0x209   : > { %s1581_s16 = smov %s1569_s27  ;;  %20 = sbr.rel (!%p1485_p10) target bundleno = 14 (0xe), region = 94 }
 0x20a   : > { %s1582_s17 = smov %s1570_s30 }
 0x20d   : > { %s1584_s21 = smov %s1573_s8 }
 0x20e   :  { %620 = vsyncpa [#allocation4], 1 }
 0x20f   :  { %622 = vsyncpa [#allocation4 + $0x1], 1 }
 0x210   :  { %623 = vsyncpa [#allocation7], 1 }
 0x211   :  { %625 = vsyncpa [#allocation7 + $0x1], 1 }
 0x212   :  { %626 = vsyncpa [#allocation5], 1 }
 0x213   :  { %628 = vsyncpa [#allocation5 + $0x1], 1 }

</bundles_post_ra>
